<compile_context>
chip_gen: v5e
topology: v5e:2x2
jax: 0.10.0
libtpu: 0.0.40
codegen_flags: <defaults>
</compile_context>

<pallas_src>
import jax
import jax.numpy as jnp
from jax.experimental import pallas as pl
from jax.experimental.pallas import tpu as pltpu

_LANE = 128                    # lane padding for the final weight (MXU-friendly N)
_NEG_SLOPE = 0.2               # LeakyReLU negative slope from the PyTorch module
_COMPUTE_DTYPE = jnp.bfloat16  # MXU operand dtype
_VMEM_BUDGET = 24 * 2**20      # per-tile budget: headroom under v7x's 32 MiB scoped default


def _fused_disc_kernel(x_ref,
                       w1_ref, b1_ref,
                       w2_ref, b2_ref,
                       w3_ref, b3_ref,
                       w4_ref, b4_ref,
                       o_ref):
    """Fully fused 4-layer MLP on one batch tile.

    x_ref : (tm, im_dim)   input activations (original dtype, e.g. f32)
    wN    : (Din, Dout)    bf16 weights, VMEM-resident across the grid
                           (w4 is lane-padded to (h, 128); only column 0 is real)
    bN    : (1, Dout)      f32 biases (b4 is (1, 1))
    o_ref : (tm, 1)        f32 logits
    """
    # Cast to the MXU operand dtype inside the kernel (no separate XLA cast pass).
    h = x_ref[...].astype(_COMPUTE_DTYPE)

    # Three discriminator blocks: MXU dot (bf16 in, f32 acc) + f32 VPU epilogue.
    for w_ref, b_ref in ((w1_ref, b1_ref), (w2_ref, b2_ref), (w3_ref, b3_ref)):
        y = jnp.dot(h, w_ref[...], preferred_element_type=jnp.float32)
        y = y + b_ref[...]                       # f32 bias add
        y = jnp.maximum(y, _NEG_SLOPE * y)       # LeakyReLU(0.2): mul + max
        h = y.astype(_COMPUTE_DTYPE)             # back to bf16 for the next MXU dot

    # Final Linear: dot against the lane-padded w4; keep only the real column.
    y = jnp.dot(h, w4_ref[...], preferred_element_type=jnp.float32)
    o_ref[...] = (y[:, :1] + b4_ref[...]).astype(o_ref.dtype)


def _vmem_bytes(tm, im_dim, hidden_dim):
    """Rough per-tile VMEM live-set estimate (double-buffered I/O + temps)."""
    h4, h2, h1 = 4 * hidden_dim, 2 * hidden_dim, hidden_dim
    x_blocks = 2 * tm * im_dim * 4                                   # f32 input, 2 buffers
    weights = 2 * 2 * (im_dim * h4 + h4 * h2 + h2 * h1 + h1 * _LANE)  # bf16, 2 buffers
    biases = 2 * 4 * (h4 + h2 + h1 + 1)
    temps = tm * (2 * im_dim + 6 * h4 + 6 * h2 + 6 * h1 + 4 * _LANE)  # bf16 h + f32 y
    out_blocks = 2 * tm * 4
    return x_blocks + weights + biases + temps + out_blocks


def _pick_tm(batch, im_dim, hidden_dim):
    """Batch tile: 128-multiple, <=1024 rows, grid >= 2 when possible, fits VMEM budget."""
    if batch <= 128:
        return batch  # single full-batch tile (block == full dim is always legal)
    tm = max(128, min(1024, (batch // 2 // 128) * 128))   # keep >= 2 grid steps (v7x)
    while tm > 128 and _vmem_bytes(tm, im_dim, hidden_dim) > _VMEM_BUDGET:
        tm -= 128
    return tm


def prepare_params(params, compute_dtype=_COMPUTE_DTYPE):
    """One-time pad/cast of parameters into kernel-ready form (cache the result).

    Input: [(w1,b1),(w2,b2),(w3,b3),(w4,b4)] with w: (din,dout) and b: (1,dout).
    Output: bf16 weights (w4 lane-padded to (h, 128)), f32 biases (b4 as (1,1)).
    """
    (w1, b1), (w2, b2), (w3, b3), (w4, b4) = params
    hdim, out_dim = w4.shape
    w4p = jnp.zeros((hdim, _LANE), compute_dtype).at[:, :out_dim].set(
        w4.astype(compute_dtype))
    return (
        (w1.astype(compute_dtype), b1.astype(jnp.float32)),
        (w2.astype(compute_dtype), b2.astype(jnp.float32)),
        (w3.astype(compute_dtype), b3.astype(jnp.float32)),
        (w4p, b4.astype(jnp.float32).reshape(1, 1)),
    )


def ff_discriminator_forward(image, prepared_params):
    """Forward pass: image (batch, im_dim) -> logits (batch, 1) in f32."""
    B, im_dim = image.shape
    (w1, b1), (w2, b2), (w3, b3), (w4p, b4) = prepared_params
    hidden_dim = w3.shape[1]

    tm = _pick_tm(B, im_dim, hidden_dim)
    grid = (pl.cdiv(B, tm),)  # partial last tile is masked by Pallas

    def resident(arr):
        # Full block + constant index_map -> stays resident in VMEM across the grid.
        return pl.BlockSpec(arr.shape, lambda i: (0, 0))

    flops = 2 * B * (w1.shape[0] * w1.shape[1] + w2.shape[0] * w2.shape[1]
                     + w3.shape[0] * w3.shape[1] + w4p.shape[0] * w4p.shape[1])
    bytes_accessed = (
        image.size * image.dtype.itemsize
        + sum(a.size * a.dtype.itemsize for a in (w1, b1, w2, b2, w3, b3, w4p, b4))
        + B * 4)

    est = _vmem_bytes(tm, im_dim, hidden_dim)
    vmem_limit = int(max(32 * 2**20, min(2 * est, 96 * 2**20)))

    out = pl.pallas_call(
        _fused_disc_kernel,
        out_shape=jax.ShapeDtypeStruct((B, 1), jnp.float32),
        grid_spec=pl.GridSpec(
            grid=grid,
            in_specs=[
                pl.BlockSpec((tm, im_dim), lambda i: (i, 0)),   # x: batch-tiled
                resident(w1), resident(b1),
                resident(w2), resident(b2),
                resident(w3), resident(b3),
                resident(w4p), resident(b4),
            ],
            out_specs=pl.BlockSpec((tm, 1), lambda i: (i, 0)),
        ),
        compiler_params=pltpu.CompilerParams(
            dimension_semantics=("parallel",),   # shard the batch grid across TCs (v7x)
            vmem_limit_bytes=vmem_limit,
        ),
        cost_estimate=pl.CostEstimate(
            flops=flops, transcendentals=0, bytes_accessed=bytes_accessed),
    )(image, w1, b1, w2, b2, w3, b3, w4p, b4)

    return out


def init_params(key, im_dim, hidden_dim, dtype=jnp.float32):
    """Deterministic synthetic parameters (PyTorch Linear shapes, stored transposed)."""
    dims = [im_dim, hidden_dim * 4, hidden_dim * 2, hidden_dim, 1]
    params = []
    for i in range(4):
        din, dout = dims[i], dims[i + 1]
        key, kw, kb = jax.random.split(key, 3)
        # Like torch's default Linear init: U(-1/sqrt(din), 1/sqrt(din)).
        bound = 1.0 / jnp.sqrt(jnp.float32(din))
        w = jax.random.uniform(kw, (din, dout), dtype, -bound, bound)
        b = jax.random.uniform(kb, (1, dout), dtype, -bound, bound)
        params.append((w, b))
    return params


def _reference_forward(image, params):
    """Pure-JAX reference using the same numeric recipe as the kernel."""
    x = image.astype(_COMPUTE_DTYPE)
    for (w, b) in params[:3]:
        y = jnp.dot(x, w.astype(_COMPUTE_DTYPE), preferred_element_type=jnp.float32)
        y = y + b.astype(jnp.float32)
        y = jnp.maximum(y, _NEG_SLOPE * y)
        x = y.astype(_COMPUTE_DTYPE)
    w, b = params[3]
    y = jnp.dot(x, w.astype(_COMPUTE_DTYPE), preferred_element_type=jnp.float32)
    return y + b.astype(jnp.float32)


if __name__ == "__main__":
    # Small shapes consistent with the module (flattened image, hidden_dim).
    batch, im_dim, hidden_dim = 8, 64, 32

    key = jax.random.PRNGKey(0)
    key, kimg = jax.random.split(key)
    image = jax.random.normal(kimg, (batch, im_dim), jnp.float32)

    params = init_params(key, im_dim, hidden_dim)
    prepared = prepare_params(params)   # pad/cast once, reuse across calls

    out = jax.block_until_ready(ff_discriminator_forward(image, prepared))
    ref = _reference_forward(image, params)
    assert out.shape == (batch, 1), out.shape
    assert jnp.allclose(out, ref, atol=2e-3, rtol=2e-3), "mismatch vs reference (small)"

    # Second check: batch not divisible by the tile -> cdiv grid with a masked
    # partial last tile (exercises the non-divisible-batch fix).
    key, kimg2 = jax.random.split(key)
    batch2 = 200
    image2 = jax.random.normal(kimg2, (batch2, im_dim), jnp.float32)
    out2 = jax.block_until_ready(ff_discriminator_forward(image2, prepared))
    ref2 = _reference_forward(image2, params)
    assert out2.shape == (batch2, 1), out2.shape
    assert jnp.allclose(out2, ref2, atol=2e-3, rtol=2e-3), "mismatch vs reference (ragged)"

    print("KERNEL_OK")
</pallas_src>

<mosaic_0001>
module attributes {stable_mosaic.version = 11 : i64} {
  func.func @_fused_disc_kernel(%arg0: i32, %arg1: memref<8x64xf32, #tpu.memory_space<vmem>>, %arg2: memref<64x128xbf16, #tpu.memory_space<vmem>>, %arg3: memref<1x128xf32, #tpu.memory_space<vmem>>, %arg4: memref<128x64xbf16, #tpu.memory_space<vmem>>, %arg5: memref<1x64xf32, #tpu.memory_space<vmem>>, %arg6: memref<64x32xbf16, #tpu.memory_space<vmem>>, %arg7: memref<1x32xf32, #tpu.memory_space<vmem>>, %arg8: memref<32x128xbf16, #tpu.memory_space<vmem>>, %arg9: memref<1x1xf32, #tpu.memory_space<vmem>>, %arg10: memref<8x1xf32, #tpu.memory_space<vmem>>) attributes {dimension_semantics = [#tpu.dimension_semantics<parallel>], iteration_bounds = array<i64: 1>, scalar_prefetch = 0 : i64, scratch_operands = 0 : i64, tpu.core_type = #tpu.core_type<tc>, window_params = [{transform_indices = @transform_0, window_bounds = array<i64: 8, 64>}, {pipeline_mode = #tpu.pipeline_mode<synchronous>, transform_indices = @transform_1, window_bounds = array<i64: 64, 128>}, {pipeline_mode = #tpu.pipeline_mode<synchronous>, transform_indices = @transform_2, window_bounds = array<i64: 1, 128>}, {pipeline_mode = #tpu.pipeline_mode<synchronous>, transform_indices = @transform_3, window_bounds = array<i64: 128, 64>}, {pipeline_mode = #tpu.pipeline_mode<synchronous>, transform_indices = @transform_4, window_bounds = array<i64: 1, 64>}, {pipeline_mode = #tpu.pipeline_mode<synchronous>, transform_indices = @transform_5, window_bounds = array<i64: 64, 32>}, {pipeline_mode = #tpu.pipeline_mode<synchronous>, transform_indices = @transform_6, window_bounds = array<i64: 1, 32>}, {pipeline_mode = #tpu.pipeline_mode<synchronous>, transform_indices = @transform_7, window_bounds = array<i64: 32, 128>}, {pipeline_mode = #tpu.pipeline_mode<synchronous>, transform_indices = @transform_8, window_bounds = array<i64: 1, 1>}, {transform_indices = @transform_9, window_bounds = array<i64: 8, 1>}]} {
    %c0 = arith.constant 0 : index
    %c0_0 = arith.constant 0 : index
    %0 = vector.load %arg1[%c0, %c0_0] : memref<8x64xf32, #tpu.memory_space<vmem>>, vector<8x64xf32>
    %1 = arith.truncf %0 : vector<8x64xf32> to vector<8x64xbf16>
    %c0_1 = arith.constant 0 : index
    %c0_2 = arith.constant 0 : index
    %2 = vector.load %arg2[%c0_1, %c0_2] : memref<64x128xbf16, #tpu.memory_space<vmem>>, vector<64x128xbf16>
    %cst = arith.constant dense<0.000000e+00> : vector<8x128xf32>
    %3 = tpu.matmul %1, %2, %cst {dimension_numbers = #tpu.dot_dimension_numbers<[1], [0], [0], [1], [0, 0, 1, 1], [], []>} : vector<8x64xbf16>, vector<64x128xbf16>, vector<8x128xf32> -> vector<8x128xf32>
    %c0_3 = arith.constant 0 : index
    %c0_4 = arith.constant 0 : index
    %4 = vector.load %arg3[%c0_3, %c0_4] : memref<1x128xf32, #tpu.memory_space<vmem>>, vector<1x128xf32>
    %5 = vector.broadcast %4 : vector<1x128xf32> to vector<8x128xf32>
    %6 = arith.addf %3, %5 : vector<8x128xf32>
    %cst_5 = arith.constant 2.000000e-01 : f32
    %7 = vector.broadcast %cst_5 : f32 to vector<8x128xf32>
    %8 = arith.mulf %7, %6 : vector<8x128xf32>
    %9 = arith.maximumf %6, %8 : vector<8x128xf32>
    %10 = arith.truncf %9 : vector<8x128xf32> to vector<8x128xbf16>
    %c0_6 = arith.constant 0 : index
    %c0_7 = arith.constant 0 : index
    %11 = vector.load %arg4[%c0_6, %c0_7] : memref<128x64xbf16, #tpu.memory_space<vmem>>, vector<128x64xbf16>
    %cst_8 = arith.constant dense<0.000000e+00> : vector<8x64xf32>
    %12 = tpu.matmul %10, %11, %cst_8 {dimension_numbers = #tpu.dot_dimension_numbers<[1], [0], [0], [1], [0, 0, 1, 1], [], []>} : vector<8x128xbf16>, vector<128x64xbf16>, vector<8x64xf32> -> vector<8x64xf32>
    %c0_9 = arith.constant 0 : index
    %c0_10 = arith.constant 0 : index
    %13 = vector.load %arg5[%c0_9, %c0_10] : memref<1x64xf32, #tpu.memory_space<vmem>>, vector<1x64xf32>
    %14 = vector.broadcast %13 : vector<1x64xf32> to vector<8x64xf32>
    %15 = arith.addf %12, %14 : vector<8x64xf32>
    %cst_11 = arith.constant 2.000000e-01 : f32
    %16 = vector.broadcast %cst_11 : f32 to vector<8x64xf32>
    %17 = arith.mulf %16, %15 : vector<8x64xf32>
    %18 = arith.maximumf %15, %17 : vector<8x64xf32>
    %19 = arith.truncf %18 : vector<8x64xf32> to vector<8x64xbf16>
    %c0_12 = arith.constant 0 : index
    %c0_13 = arith.constant 0 : index
    %20 = vector.load %arg6[%c0_12, %c0_13] : memref<64x32xbf16, #tpu.memory_space<vmem>>, vector<64x32xbf16>
    %cst_14 = arith.constant dense<0.000000e+00> : vector<8x32xf32>
    %21 = tpu.matmul %19, %20, %cst_14 {dimension_numbers = #tpu.dot_dimension_numbers<[1], [0], [0], [1], [0, 0, 1, 1], [], []>} : vector<8x64xbf16>, vector<64x32xbf16>, vector<8x32xf32> -> vector<8x32xf32>
    %c0_15 = arith.constant 0 : index
    %c0_16 = arith.constant 0 : index
    %22 = vector.load %arg7[%c0_15, %c0_16] : memref<1x32xf32, #tpu.memory_space<vmem>>, vector<1x32xf32>
    %23 = vector.broadcast %22 : vector<1x32xf32> to vector<8x32xf32>
    %24 = arith.addf %21, %23 : vector<8x32xf32>
    %cst_17 = arith.constant 2.000000e-01 : f32
    %25 = vector.broadcast %cst_17 : f32 to vector<8x32xf32>
    %26 = arith.mulf %25, %24 : vector<8x32xf32>
    %27 = arith.maximumf %24, %26 : vector<8x32xf32>
    %28 = arith.truncf %27 : vector<8x32xf32> to vector<8x32xbf16>
    %c0_18 = arith.constant 0 : index
    %c0_19 = arith.constant 0 : index
    %29 = vector.load %arg8[%c0_18, %c0_19] : memref<32x128xbf16, #tpu.memory_space<vmem>>, vector<32x128xbf16>
    %cst_20 = arith.constant dense<0.000000e+00> : vector<8x128xf32>
    %30 = tpu.matmul %28, %29, %cst_20 {dimension_numbers = #tpu.dot_dimension_numbers<[1], [0], [0], [1], [0, 0, 1, 1], [], []>} : vector<8x32xbf16>, vector<32x128xbf16>, vector<8x128xf32> -> vector<8x128xf32>
    %31 = vector.extract_strided_slice %30 {offsets = [0, 0], sizes = [8, 1], strides = [1, 1]} : vector<8x128xf32> to vector<8x1xf32>
    %c0_21 = arith.constant 0 : index
    %c0_22 = arith.constant 0 : index
    %32 = vector.load %arg9[%c0_21, %c0_22] : memref<1x1xf32, #tpu.memory_space<vmem>>, vector<1x1xf32>
    %33 = vector.broadcast %32 : vector<1x1xf32> to vector<8x1xf32>
    %34 = arith.addf %31, %33 : vector<8x1xf32>
    %c0_23 = arith.constant 0 : index
    %c0_24 = arith.constant 0 : index
    %35 = vector.load %arg10[%c0_23, %c0_24] : memref<8x1xf32, #tpu.memory_space<vmem>>, vector<8x1xf32>
    tpu.vector_store %arg10[%c0_23, %c0_24], %34 {strides = array<i32>} : memref<8x1xf32, #tpu.memory_space<vmem>>, vector<8x1xf32>,
    return
  }
  func.func @transform_0(%arg0: i32) -> (i32, i32) {
    %c0_i32 = arith.constant 0 : i32
    %c0_i32_0 = arith.constant 0 : i32
    return %arg0, %c0_i32 : i32, i32
  }
  func.func @transform_1(%arg0: i32) -> (i32, i32) {
    %c0_i32 = arith.constant 0 : i32
    %c0_i32_0 = arith.constant 0 : i32
    %c0_i32_1 = arith.constant 0 : i32
    return %c0_i32, %c0_i32_0 : i32, i32
  }
  func.func @transform_2(%arg0: i32) -> (i32, i32) {
    %c0_i32 = arith.constant 0 : i32
    %c0_i32_0 = arith.constant 0 : i32
    %c0_i32_1 = arith.constant 0 : i32
    return %c0_i32, %c0_i32_0 : i32, i32
  }
  func.func @transform_3(%arg0: i32) -> (i32, i32) {
    %c0_i32 = arith.constant 0 : i32
    %c0_i32_0 = arith.constant 0 : i32
    %c0_i32_1 = arith.constant 0 : i32
    return %c0_i32, %c0_i32_0 : i32, i32
  }
  func.func @transform_4(%arg0: i32) -> (i32, i32) {
    %c0_i32 = arith.constant 0 : i32
    %c0_i32_0 = arith.constant 0 : i32
    %c0_i32_1 = arith.constant 0 : i32
    return %c0_i32, %c0_i32_0 : i32, i32
  }
  func.func @transform_5(%arg0: i32) -> (i32, i32) {
    %c0_i32 = arith.constant 0 : i32
    %c0_i32_0 = arith.constant 0 : i32
    %c0_i32_1 = arith.constant 0 : i32
    return %c0_i32, %c0_i32_0 : i32, i32
  }
  func.func @transform_6(%arg0: i32) -> (i32, i32) {
    %c0_i32 = arith.constant 0 : i32
    %c0_i32_0 = arith.constant 0 : i32
    %c0_i32_1 = arith.constant 0 : i32
    return %c0_i32, %c0_i32_0 : i32, i32
  }
  func.func @transform_7(%arg0: i32) -> (i32, i32) {
    %c0_i32 = arith.constant 0 : i32
    %c0_i32_0 = arith.constant 0 : i32
    %c0_i32_1 = arith.constant 0 : i32
    return %c0_i32, %c0_i32_0 : i32, i32
  }
  func.func @transform_8(%arg0: i32) -> (i32, i32) {
    %c0_i32 = arith.constant 0 : i32
    %c0_i32_0 = arith.constant 0 : i32
    %c0_i32_1 = arith.constant 0 : i32
    return %c0_i32, %c0_i32_0 : i32, i32
  }
  func.func @transform_9(%arg0: i32) -> (i32, i32) {
    %c0_i32 = arith.constant 0 : i32
    %c0_i32_0 = arith.constant 0 : i32
    return %arg0, %c0_i32 : i32, i32
  }
}

</mosaic_0001>

<bundles_post_ra>
// kernel: tpu_custom_call.1
= control target key start
LH: loop header
LB: loop body
LE: loop exit
PB: predicated region body
PF: predicated region fallthrough
CT: control target
= control target key end

     0   :  { %vm73_vm0 = vcmask 523264   ;;  %vm248_vm1 = vcmask 261120   ;;  %vm270_vm2 = vcmask 7168   ;;  %s497_s1 = inlined_call_operand.vmem [shape: bf16[64,128], index: 1, kind: input, shape index: {}]   ;;  %s498_s3 = inlined_call_operand.vmem [shape: bf16[128,64], index: 3, kind: input, shape index: {}]   ;;  %s499_s2 = inlined_call_operand.vmem [shape: f32[1,128], index: 2, kind: input, shape index: {}]   ;;  %s500_s0 = inlined_call_operand.vmem [shape: f32[8,64], index: 0, kind: input, shape index: {}]   ;;  %s501_s4 = inlined_call_operand.vmem [shape: f32[1,64], index: 4, kind: input, shape index: {}]   ;;  %s502_s5 = inlined_call_operand.vmem [shape: bf16[64,32], index: 5, kind: input, shape index: {}]   ;;  %s503_s6 = inlined_call_operand.vmem [shape: f32[1,32], index: 6, kind: input, shape index: {}]   ;;  %s504_s7 = inlined_call_operand.vmem [shape: bf16[32,128], index: 7, kind: input, shape index: {}]   ;;  %s505_s8 = inlined_call_operand.<no memory space> [shape: f32[1,1], index: 8, kind: input, shape index: {}]   ;;  %s506_s9 = inlined_call_operand.vmem [shape: f32[8,1], index: 9, kind: output, shape index: {}]  }
   0x1   :  { %v354_v0 = vld [vmem:[%s497_s1 + $0x18] sm:$0xff]  ;;  %v353_v2 = vld [vmem:[%s497_s1 + $0x10] sm:$0xff]  ;;  %v352_v4 = vld [vmem:[%s497_s1 + $0x8] sm:$0xff]  ;;  %v14_v34 = vstv %s505_s8 }
   0x2   :  { %v362_v1 = vld [vmem:[%s498_s3 + $0x38] sm:$0xff]  ;;  %81 = vmatpush.bf16.msra.mxu0 %v354_v0  ;;  %v361_v3 = vld [vmem:[%s498_s3 + $0x30] sm:$0xff]  ;;  %v360_v5 = vld [vmem:[%s498_s3 + $0x28] sm:$0xff]  ;;  %15 = vst [vmem:[#allocation2] sm:$0x1] %v14_v34 }
   0x3   :  { %161 = vmatpush.bf16.msra.mxu1 %v362_v1  ;;  %v351_v6 = vld [vmem:[%s497_s1] sm:$0xff]  ;;  %v358_v10 = vld [vmem:[%s498_s3 + $0x18] sm:$0xff]  ;;  %v357_v11 = vld [vmem:[%s498_s3 + $0x10] sm:$0xff] }
   0x4   :  { %v35_v7 = vld [vmem:[%s500_s0] sm:$0xff]  ;;  %v356_v12 = vld [vmem:[%s498_s3 + $0x8] sm:$0xff]  ;;  %v366_v14 = vld [vmem:[%s502_s5 + $0x18] sm:$0xff] }
   0x5   :  { %v359_v8 = vld [vmem:[%s498_s3 + $0x20] sm:$0xff]  ;;  %v36_v9 = vpack.c.bf16 %v35_v7, %v35_v7  ;;  %220 = vmatpush.bf16.msra.mxu2 %v366_v14  ;;  %v365_v15 = vld [vmem:[%s502_s5 + $0x10] sm:$0xff]  ;;  %v364_v23 = vld [vmem:[%s502_s5 + $0x8] sm:$0xff] }
   0x6   :  { %82 = vmatpush.bf16.msra.mxu0 %v353_v2  ;;  %v355_v13 = vld [vmem:[%s498_s3] sm:$0xff]  ;;  %v368_v32 = vld [vmem:[%s504_s7 + $0x8] sm:$0xff] }
   0x7   :  { %162 = vmatpush.bf16.msra.mxu1 %v361_v3  ;;  %v369_v16 = vld [vmem:[%s499_s2] ss:$0 sm:$0xff]  ;;  %258 = vmatpush.bf16.msra.mxu3 %v368_v32 }
   0x8   :  { %v363_v24 = vld [vmem:[%s502_s5] sm:$0xff] }
   0x9   :  { %221 = vmatpush.bf16.msra.mxu2 %v365_v15  ;;  %v370_v25 = vld [vmem:[%s501_s4] ss:$0 sm:$0xff] }
   0xa   :  { %83 = vmatpush.bf16.msra.mxu0 %v352_v4  ;;  %v367_v33 = vld [vmem:[%s504_s7] sm:$0xff] }
   0xb   :  { %163 = vmatpush.bf16.msra.mxu1 %v360_v5  ;;  %259 = vmatpush.bf16.msra.mxu3 %v367_v33  ;;  %v371_v35 = vld [vmem:[%s503_s6] ss:$0 sm:$0xff] }
   0xc   :  { %v372_v42 = vld [vmem:[#allocation2] ss:$0 sm:$0xff] }
   0xd   :  { %222 = vmatpush.bf16.msra.mxu2 %v364_v23 }
   0xe   :  { %84 = vmatpush.bf16.msra.mxu0 %v351_v6 }
   0xf   :  { %164 = vmatpush.bf16.msra.mxu1 %v359_v8 }
  0x11   :  { %292 = vmatmul.msk.bf16.vlgmr.msra.gmra.mxu0 %vm73_vm0, %v36_v9  ;;  %223 = vmatpush.bf16.msra.mxu2 %v363_v24 }
  0x13   :  { %165 = vmatpush.bf16.msra.mxu1 %v358_v10 }
  0x17   :  { %166 = vmatpush.bf16.msra.mxu1 %v357_v11 }
  0x1b   :  { %167 = vmatpush.bf16.msra.mxu1 %v356_v12 }
  0x1f   :  { %168 = vmatpush.bf16.msra.mxu1 %v355_v13 }
  0x8e   :  { %v86_v17 = vpop.f32.mrf.mxu0 }
  0x8f   :  { %v87_v18 = vadd.f32 %v369_v16, %v86_v17 }
  0x91   :  { %v90_v19 = vmul.f32 0.2, %v87_v18 }
  0x93   :  { %v91_v20 = vmax.f32 %v87_v18, %v90_v19 }
  0x95   :  { %v92_v21 = vpack.c.bf16 %v91_v20, %v91_v20 }
  0x96   :  { %v88_v22 = vpop.f32.mrf.mxu0 }
  0x97   :  { %169 = vmatmul.bf16.vlgmr.msra.gmra.mxu1 %v92_v21 }
 0x114   :  { %v170_v26 = vpop.f32.mrf.mxu1 }
 0x115   :  { %v171_v27 = vadd.f32 %v370_v25, %v170_v26 }
 0x117   :  { %v174_v28 = vmul.f32 0.2, %v171_v27 }
 0x119   :  { %v175_v29 = vmax.f32 %v171_v27, %v174_v28 }
 0x11b   :  { %v176_v30 = vpack.c.bf16 %v175_v29, %v175_v29 }
 0x11c   :  { %v172_v31 = vpop.f32.mrf.mxu1 }
 0x11d   :  { %341 = vmatmul.msk.bf16.vlgmr.msra.gmra.mxu2 %vm73_vm0, %v176_v30 }
 0x1a0   :  { %v225_v36 = vpop.f32.mrf.mxu2 }
 0x1a1   :  { %v226_v37 = vadd.f32 %v371_v35, %v225_v36 }
 0x1a3   :  { %v229_v38 = vmul.f32 0.2, %v226_v37 }
 0x1a5   :  { %v230_v39 = vmax.f32 %v226_v37, %v229_v38 }
 0x1a7   :  { %v231_v40 = vpack.c.bf16 %v230_v39, %v230_v39 }
 0x1a8   :  { %v227_v41 = vpop.f32.mrf.mxu2 }
 0x1a9   :  { %350 = vmatmul.msk.bf16.vlgmr.msra.gmra.mxu3 %vm248_vm1, %v231_v40 }
 0x22c   :  { %v261_v43 = vpop.f32.mrf.mxu3 }
 0x22d   :  { %v269_v44 = vadd.f32 %v372_v42, %v261_v43 }
 0x22f   :  { %271 = vst.msk [vmem:[%s506_s9] sm:$0xff] %vm270_vm2, %v269_v44 }
 0x234   :  { %v263_v45 = vpop.f32.mrf.mxu3 }

</bundles_post_ra>
